<compile_context>
chip_gen: v7x
topology: tpu7x:2x2x1
jax: 0.10.0
libtpu: 0.0.40
codegen_flags: <defaults>
</compile_context>

<pallas_src>
import numpy as np
import jax
import jax.numpy as jnp
from jax.experimental import pallas as pl
from jax.experimental.pallas import tpu as pltpu


def _widen_conv_weights(w_hwio, width, lin):
    """Width-unrolled 3x3-conv weights with the 3 dy taps stacked along columns.

    Returns M of shape (lin, 3*width*Cout) such that, for an input row laid out
    as lanes j = v*Cin + ci (v = width index, zero lanes in the padding tail),
    `row @ M` yields, in column group dy (columns [dy*W*Cout, (dy+1)*W*Cout)),
    the dy-tap partial sums at lanes x*Cout + co:
        M[v*Cin + ci, dy*W*Cout + x*Cout + co] = w[dy, v - x + 1, ci, co]
    (zero outside the 3-tap band).
    """
    kh, kw, cin, cout = w_hwio.shape
    w_np = np.asarray(w_hwio, dtype=np.float32)
    m = np.zeros((kh, lin, width * cout), np.float32)
    for dy in range(kh):
        for x in range(width):
            for dx in range(kw):
                v = x + dx - 1
                if 0 <= v < width:
                    m[dy, v * cin:(v + 1) * cin, x * cout:(x + 1) * cout] = w_np[dy, dx]
    return jnp.asarray(np.concatenate([m[0], m[1], m[2]], axis=1))


def conv_block_forward(x_nchw, params, pool_size=(2, 2), pool_type='avg',
                       eps=1e-5, batch_block=16, mxu_dtype=jnp.bfloat16):
    assert pool_type == 'avg' and tuple(pool_size) == (2, 2)
    (w1, b1, g1, be1, m1, v1, w2, b2, g2, be2, m2, v2) = params

    N, Cin, H, W = x_nchw.shape
    Cout = w1.shape[3]
    assert H % 2 == 0 and W % 2 == 0
    Ho, Wo = H // 2, W // 2
    WC = W * Cout                            # lane width of intermediates (=128 here)
    Lin = ((W * Cin + 127) // 128) * 128     # lane-padded input-row width

    # ---- batch tiling: fold Nb images into the matmul M dimension -----------
    divs = [d for d in range(1, N + 1) if N % d == 0 and d <= max(1, batch_block)]
    Nb = max(divs)
    # Prefer >= 2 grid steps when that still keeps the MXU rows full (both v7x
    # TensorCores busy via dimension_semantics=("parallel",) + DMA pipelining).
    for d in sorted(divs, reverse=True):
        if N // d >= 2 and d * H >= 128:
            Nb = d
            break
    G = N // Nb
    NbH = Nb * H

    # ---------------- wrapper-side layout plumbing ----------------
    # input rows: (G, Nb*H, Lin), lane j = w*Cin + ci, zero lanes in the tail.
    # No halo rows: image-boundary taps are handled in-kernel by seam masks.
    x_rows = jnp.transpose(x_nchw, (0, 2, 3, 1)).astype(jnp.float32)
    x_rows = x_rows.reshape(N, H, W * Cin)
    x_rows = jnp.pad(x_rows, ((0, 0), (0, 0), (0, Lin - W * Cin)))
    x_rows = x_rows.reshape(G, NbH, Lin).astype(mxu_dtype)

    # width-unrolled conv weights, dy taps stacked along the output columns.
    w1w = _widen_conv_weights(w1, W, Lin).astype(mxu_dtype)   # (Lin, 3*WC)
    w2w = _widen_conv_weights(w2, W, WC).astype(mxu_dtype)    # (WC,  3*WC)

    # fold conv bias + inference BN into per-channel scale/shift, tiled over W.
    s1 = g1 / jnp.sqrt(v1 + eps)
    t1 = be1 + (b1 - m1) * s1
    s2 = g2 / jnp.sqrt(v2 + eps)
    t2 = be2 + (b2 - m2) * s2
    s1w = jnp.tile(s1, W).reshape(1, WC).astype(jnp.float32)
    t1w = jnp.tile(t1, W).reshape(1, WC).astype(jnp.float32)
    s2w = jnp.tile(s2, W).reshape(1, WC).astype(jnp.float32)
    t2w = jnp.tile(t2, W).reshape(1, WC).astype(jnp.float32)

    # image-seam masks over the flattened (n_local, h) rows:
    #   mask0 zeroes the dy=0 (row-above) tap at h == 0,
    #   mask2 zeroes the dy=2 (row-below) tap at h == H-1.
    rr = np.arange(NbH)
    mask0 = jnp.asarray((rr % H != 0).astype(np.float32).reshape(NbH, 1))
    mask2 = jnp.asarray((rr % H != (H - 1)).astype(np.float32).reshape(NbH, 1))

    def kernel(x_ref, w1_ref, s1_ref, t1_ref, w2_ref, s2_ref, t2_ref,
               m0_ref, m2_ref, out_ref):
        m0 = m0_ref[...]                       # (NbH, 1) f32 seam masks
        m2 = m2_ref[...]

        def conv3x3(lhs, w_ref):
            # ONE wide bf16 matmul (f32 accumulate); column group dy holds the
            # dy-tap partials of every row.  (NbH, K) x (K, 3*WC).
            full = jnp.dot(lhs, w_ref[...], preferred_element_type=jnp.float32)
            acc = full[:, WC:2 * WC]                                   # dy=1 (centre)
            # dy=0 needs the row above: shift down by 1 (XLU sublane roll); the
            # wrapped / cross-image rows are finite garbage zeroed by the mask.
            acc = acc + m0 * pltpu.roll(full[:, 0:WC], shift=1, axis=0)
            # dy=2 needs the row below: shift up by 1 (== roll by NbH-1).
            acc = acc + m2 * pltpu.roll(full[:, 2 * WC:3 * WC], shift=NbH - 1, axis=0)
            return acc

        # conv1 -> BN1 -> ReLU (elementwise in f32)
        h1 = jnp.maximum(conv3x3(x_ref[...], w1_ref) * s1_ref[...] + t1_ref[...], 0.0)
        # conv2 -> BN2 -> ReLU (LHS downcast to bf16 for the MXU)
        h2 = jnp.maximum(conv3x3(h1.astype(mxu_dtype), w2_ref) * s2_ref[...] + t2_ref[...], 0.0)

        # ---- 2x2 average pool ------------------------------------------------
        # pool along H on the VPU: add adjacent row pairs.
        y3 = h2.reshape(NbH // 2, 2, WC)
        rowsum = y3[:, 0, :] + y3[:, 1, :]                 # (Nb*Ho, WC)
        # pool along W via an XLU lane roll (shift left by Cout): valid results
        # land at even-x lane blocks; odd-x / wrapped blocks are discarded by
        # the wrapper's even-column select.
        pooled = (rowsum + pltpu.roll(rowsum, shift=WC - Cout, axis=1)) * 0.25
        out_ref[...] = pooled                              # lane-dense (.., 128) store

    out_k = pl.pallas_call(
        kernel,
        out_shape=jax.ShapeDtypeStruct((G, NbH // 2, WC), jnp.float32),
        grid_spec=pltpu.PrefetchScalarGridSpec(
            num_scalar_prefetch=0,
            grid=(G,),
            in_specs=[
                pl.BlockSpec((None, NbH, Lin), lambda b: (b, 0, 0)),
                pl.BlockSpec((Lin, 3 * WC), lambda b: (0, 0)),
                pl.BlockSpec((1, WC), lambda b: (0, 0)),
                pl.BlockSpec((1, WC), lambda b: (0, 0)),
                pl.BlockSpec((WC, 3 * WC), lambda b: (0, 0)),
                pl.BlockSpec((1, WC), lambda b: (0, 0)),
                pl.BlockSpec((1, WC), lambda b: (0, 0)),
                pl.BlockSpec((NbH, 1), lambda b: (0, 0)),
                pl.BlockSpec((NbH, 1), lambda b: (0, 0)),
            ],
            out_specs=pl.BlockSpec((None, NbH // 2, WC), lambda b: (b, 0, 0)),
        ),
        compiler_params=pltpu.CompilerParams(
            dimension_semantics=("parallel",)),
    )(x_rows, w1w, s1w, t1w, w2w, s2w, t2w, mask0, mask2)

    # (G, Nb*Ho, W*Cout) -> (N, Ho, W, Cout) -> keep even columns -> NCHW
    out = out_k.reshape(N, Ho, W, Cout)[:, :, 0::2, :]
    return jnp.transpose(out, (0, 3, 1, 2))


def conv_block_reference(x_nchw, params, eps=1e-5):
    """Pure-JAX reference (matches PyTorch eval-mode forward)."""
    (w1, b1, g1, be1, m1, v1, w2, b2, g2, be2, m2, v2) = params
    x = jnp.transpose(x_nchw, (0, 2, 3, 1)).astype(jnp.float32)

    def conv(x, w, b):
        y = jax.lax.conv_general_dilated(
            x, w, window_strides=(1, 1), padding=((1, 1), (1, 1)),
            dimension_numbers=('NHWC', 'HWIO', 'NHWC'))
        return y + b

    y = conv(x, w1, b1)
    y = (y - m1) * (g1 / jnp.sqrt(v1 + eps)) + be1
    y = jnp.maximum(y, 0.0)
    y = conv(y, w2, b2)
    y = (y - m2) * (g2 / jnp.sqrt(v2 + eps)) + be2
    y = jnp.maximum(y, 0.0)
    N, H, W, C = y.shape
    y = y.reshape(N, H // 2, 2, W // 2, 2, C).mean(axis=(2, 4))
    return jnp.transpose(y, (0, 3, 1, 2))


if __name__ == "__main__":
    key = jax.random.PRNGKey(0)
    N, Cin, Cout, H, W = 2, 4, 8, 16, 16

    ks = jax.random.split(key, 16)
    x = jax.random.normal(ks[0], (N, Cin, H, W), jnp.float32)

    # Deterministic parameter init (HWIO weight layout).
    w1 = jax.random.normal(ks[1], (3, 3, Cin, Cout), jnp.float32) * 0.1
    b1 = jax.random.normal(ks[2], (Cout,), jnp.float32) * 0.1
    g1 = 1.0 + 0.1 * jax.random.normal(ks[3], (Cout,), jnp.float32)
    be1 = 0.1 * jax.random.normal(ks[4], (Cout,), jnp.float32)
    m1 = 0.1 * jax.random.normal(ks[5], (Cout,), jnp.float32)
    v1 = 0.5 + jnp.abs(jax.random.normal(ks[6], (Cout,), jnp.float32))

    w2 = jax.random.normal(ks[7], (3, 3, Cout, Cout), jnp.float32) * 0.1
    b2 = jax.random.normal(ks[8], (Cout,), jnp.float32) * 0.1
    g2 = 1.0 + 0.1 * jax.random.normal(ks[9], (Cout,), jnp.float32)
    be2 = 0.1 * jax.random.normal(ks[10], (Cout,), jnp.float32)
    m2 = 0.1 * jax.random.normal(ks[11], (Cout,), jnp.float32)
    v2 = 0.5 + jnp.abs(jax.random.normal(ks[12], (Cout,), jnp.float32))

    params = (w1, b1, g1, be1, m1, v1, w2, b2, g2, be2, m2, v2)

    out = conv_block_forward(x, params)
    out = jax.block_until_ready(out)

    ref = conv_block_reference(x, params)
    ref = jax.block_until_ready(ref)

    assert out.shape == (N, Cout, H // 2, W // 2), out.shape
    # bf16 MXU operands (f32 accumulate) -> relaxed tolerance vs the f32 ref.
    np.testing.assert_allclose(np.asarray(out), np.asarray(ref),
                               atol=3e-2, rtol=3e-2)
    print("KERNEL_OK")
</pallas_src>

<mosaic_0001>
module attributes {stable_mosaic.version = 11 : i64} {
  func.func @kernel(%arg0: i32, %arg1: memref<1x32x128xbf16, #tpu.memory_space<vmem>>, %arg2: memref<128x384xbf16, #tpu.memory_space<vmem>>, %arg3: memref<1x128xf32, #tpu.memory_space<vmem>>, %arg4: memref<1x128xf32, #tpu.memory_space<vmem>>, %arg5: memref<128x384xbf16, #tpu.memory_space<vmem>>, %arg6: memref<1x128xf32, #tpu.memory_space<vmem>>, %arg7: memref<1x128xf32, #tpu.memory_space<vmem>>, %arg8: memref<32x1xf32, #tpu.memory_space<vmem>>, %arg9: memref<32x1xf32, #tpu.memory_space<vmem>>, %arg10: memref<1x16x128xf32, #tpu.memory_space<vmem>>) attributes {dimension_semantics = [#tpu.dimension_semantics<parallel>], iteration_bounds = array<i64: 1>, scalar_prefetch = 0 : i64, scratch_operands = 0 : i64, tpu.core_type = #tpu.core_type<tc>, window_params = [{transform_indices = @transform_0, window_bounds = array<i64: 1, 32, 128>}, {pipeline_mode = #tpu.pipeline_mode<synchronous>, transform_indices = @transform_1, window_bounds = array<i64: 128, 384>}, {pipeline_mode = #tpu.pipeline_mode<synchronous>, transform_indices = @transform_2, window_bounds = array<i64: 1, 128>}, {pipeline_mode = #tpu.pipeline_mode<synchronous>, transform_indices = @transform_3, window_bounds = array<i64: 1, 128>}, {pipeline_mode = #tpu.pipeline_mode<synchronous>, transform_indices = @transform_4, window_bounds = array<i64: 128, 384>}, {pipeline_mode = #tpu.pipeline_mode<synchronous>, transform_indices = @transform_5, window_bounds = array<i64: 1, 128>}, {pipeline_mode = #tpu.pipeline_mode<synchronous>, transform_indices = @transform_6, window_bounds = array<i64: 1, 128>}, {pipeline_mode = #tpu.pipeline_mode<synchronous>, transform_indices = @transform_7, window_bounds = array<i64: 32, 1>}, {pipeline_mode = #tpu.pipeline_mode<synchronous>, transform_indices = @transform_8, window_bounds = array<i64: 32, 1>}, {transform_indices = @transform_9, window_bounds = array<i64: 1, 16, 128>}]} {
    %c0 = arith.constant 0 : index
    %c0_0 = arith.constant 0 : index
    %0 = vector.load %arg8[%c0, %c0_0] : memref<32x1xf32, #tpu.memory_space<vmem>>, vector<32x1xf32>
    %c0_1 = arith.constant 0 : index
    %c0_2 = arith.constant 0 : index
    %1 = vector.load %arg9[%c0_1, %c0_2] : memref<32x1xf32, #tpu.memory_space<vmem>>, vector<32x1xf32>
    %c0_3 = arith.constant 0 : index
    %c0_4 = arith.constant 0 : index
    %c0_5 = arith.constant 0 : index
    %2 = vector.load %arg1[%c0_3, %c0_4, %c0_5] : memref<1x32x128xbf16, #tpu.memory_space<vmem>>, vector<1x32x128xbf16>
    %3 = vector.shape_cast %2 : vector<1x32x128xbf16> to vector<32x128xbf16>
    %c0_6 = arith.constant 0 : index
    %c0_7 = arith.constant 0 : index
    %4 = vector.load %arg2[%c0_6, %c0_7] : memref<128x384xbf16, #tpu.memory_space<vmem>>, vector<128x384xbf16>
    %cst = arith.constant dense<0.000000e+00> : vector<32x384xf32>
    %5 = tpu.matmul %3, %4, %cst {dimension_numbers = #tpu.dot_dimension_numbers<[1], [0], [0], [1], [0, 0, 1, 1], [], []>} : vector<32x128xbf16>, vector<128x384xbf16>, vector<32x384xf32> -> vector<32x384xf32>
    %6 = vector.extract_strided_slice %5 {offsets = [0, 128], sizes = [32, 128], strides = [1, 1]} : vector<32x384xf32> to vector<32x128xf32>
    %7 = vector.extract_strided_slice %5 {offsets = [0, 0], sizes = [32, 128], strides = [1, 1]} : vector<32x384xf32> to vector<32x128xf32>
    %c1_i32 = arith.constant 1 : i32
    %8 = tpu.dynamic_rotate %7 by %c1_i32 dim 0 : vector<32x128xf32>, i32 -> vector<32x128xf32>
    %9 = vector.broadcast %0 : vector<32x1xf32> to vector<32x128xf32>
    %10 = arith.mulf %9, %8 : vector<32x128xf32>
    %11 = arith.addf %6, %10 : vector<32x128xf32>
    %12 = vector.extract_strided_slice %5 {offsets = [0, 256], sizes = [32, 128], strides = [1, 1]} : vector<32x384xf32> to vector<32x128xf32>
    %c31_i32 = arith.constant 31 : i32
    %13 = tpu.dynamic_rotate %12 by %c31_i32 dim 0 : vector<32x128xf32>, i32 -> vector<32x128xf32>
    %14 = vector.broadcast %1 : vector<32x1xf32> to vector<32x128xf32>
    %15 = arith.mulf %14, %13 : vector<32x128xf32>
    %16 = arith.addf %11, %15 : vector<32x128xf32>
    %c0_8 = arith.constant 0 : index
    %c0_9 = arith.constant 0 : index
    %17 = vector.load %arg3[%c0_8, %c0_9] : memref<1x128xf32, #tpu.memory_space<vmem>>, vector<1x128xf32>
    %18 = vector.broadcast %17 : vector<1x128xf32> to vector<32x128xf32>
    %19 = arith.mulf %16, %18 : vector<32x128xf32>
    %c0_10 = arith.constant 0 : index
    %c0_11 = arith.constant 0 : index
    %20 = vector.load %arg4[%c0_10, %c0_11] : memref<1x128xf32, #tpu.memory_space<vmem>>, vector<1x128xf32>
    %21 = vector.broadcast %20 : vector<1x128xf32> to vector<32x128xf32>
    %22 = arith.addf %19, %21 : vector<32x128xf32>
    %cst_12 = arith.constant 0.000000e+00 : f32
    %23 = vector.broadcast %cst_12 : f32 to vector<32x128xf32>
    %24 = arith.maximumf %22, %23 : vector<32x128xf32>
    %25 = arith.truncf %24 : vector<32x128xf32> to vector<32x128xbf16>
    %c0_13 = arith.constant 0 : index
    %c0_14 = arith.constant 0 : index
    %26 = vector.load %arg5[%c0_13, %c0_14] : memref<128x384xbf16, #tpu.memory_space<vmem>>, vector<128x384xbf16>
    %cst_15 = arith.constant dense<0.000000e+00> : vector<32x384xf32>
    %27 = tpu.matmul %25, %26, %cst_15 {dimension_numbers = #tpu.dot_dimension_numbers<[1], [0], [0], [1], [0, 0, 1, 1], [], []>} : vector<32x128xbf16>, vector<128x384xbf16>, vector<32x384xf32> -> vector<32x384xf32>
    %28 = vector.extract_strided_slice %27 {offsets = [0, 128], sizes = [32, 128], strides = [1, 1]} : vector<32x384xf32> to vector<32x128xf32>
    %29 = vector.extract_strided_slice %27 {offsets = [0, 0], sizes = [32, 128], strides = [1, 1]} : vector<32x384xf32> to vector<32x128xf32>
    %c1_i32_16 = arith.constant 1 : i32
    %30 = tpu.dynamic_rotate %29 by %c1_i32_16 dim 0 : vector<32x128xf32>, i32 -> vector<32x128xf32>
    %31 = vector.broadcast %0 : vector<32x1xf32> to vector<32x128xf32>
    %32 = arith.mulf %31, %30 : vector<32x128xf32>
    %33 = arith.addf %28, %32 : vector<32x128xf32>
    %34 = vector.extract_strided_slice %27 {offsets = [0, 256], sizes = [32, 128], strides = [1, 1]} : vector<32x384xf32> to vector<32x128xf32>
    %c31_i32_17 = arith.constant 31 : i32
    %35 = tpu.dynamic_rotate %34 by %c31_i32_17 dim 0 : vector<32x128xf32>, i32 -> vector<32x128xf32>
    %36 = vector.broadcast %1 : vector<32x1xf32> to vector<32x128xf32>
    %37 = arith.mulf %36, %35 : vector<32x128xf32>
    %38 = arith.addf %33, %37 : vector<32x128xf32>
    %c0_18 = arith.constant 0 : index
    %c0_19 = arith.constant 0 : index
    %39 = vector.load %arg6[%c0_18, %c0_19] : memref<1x128xf32, #tpu.memory_space<vmem>>, vector<1x128xf32>
    %40 = vector.broadcast %39 : vector<1x128xf32> to vector<32x128xf32>
    %41 = arith.mulf %38, %40 : vector<32x128xf32>
    %c0_20 = arith.constant 0 : index
    %c0_21 = arith.constant 0 : index
    %42 = vector.load %arg7[%c0_20, %c0_21] : memref<1x128xf32, #tpu.memory_space<vmem>>, vector<1x128xf32>
    %43 = vector.broadcast %42 : vector<1x128xf32> to vector<32x128xf32>
    %44 = arith.addf %41, %43 : vector<32x128xf32>
    %cst_22 = arith.constant 0.000000e+00 : f32
    %45 = vector.broadcast %cst_22 : f32 to vector<32x128xf32>
    %46 = arith.maximumf %44, %45 : vector<32x128xf32>
    %47 = vector.shape_cast %46 : vector<32x128xf32> to vector<16x2x128xf32>
    %48 = vector.extract_strided_slice %47 {offsets = [0, 0, 0], sizes = [16, 1, 128], strides = [1, 1, 1]} : vector<16x2x128xf32> to vector<16x1x128xf32>
    %49 = vector.shape_cast %48 : vector<16x1x128xf32> to vector<16x128xf32>
    %50 = vector.extract_strided_slice %47 {offsets = [0, 1, 0], sizes = [16, 1, 128], strides = [1, 1, 1]} : vector<16x2x128xf32> to vector<16x1x128xf32>
    %51 = vector.shape_cast %50 : vector<16x1x128xf32> to vector<16x128xf32>
    %52 = arith.addf %49, %51 : vector<16x128xf32>
    %c120_i32 = arith.constant 120 : i32
    %53 = tpu.dynamic_rotate %52 by %c120_i32 dim 1 : vector<16x128xf32>, i32 -> vector<16x128xf32>
    %54 = arith.addf %52, %53 : vector<16x128xf32>
    %cst_23 = arith.constant 2.500000e-01 : f32
    %55 = vector.broadcast %cst_23 : f32 to vector<16x128xf32>
    %56 = arith.mulf %54, %55 : vector<16x128xf32>
    %c0_24 = arith.constant 0 : index
    %c0_25 = arith.constant 0 : index
    %c0_26 = arith.constant 0 : index
    %57 = vector.load %arg10[%c0_24, %c0_25, %c0_26] : memref<1x16x128xf32, #tpu.memory_space<vmem>>, vector<1x16x128xf32>
    %58 = vector.shape_cast %57 : vector<1x16x128xf32> to vector<16x128xf32>
    %59 = vector.shape_cast %56 : vector<16x128xf32> to vector<1x16x128xf32>
    tpu.vector_store %arg10[%c0_24, %c0_25, %c0_26], %59 {strides = array<i32>} : memref<1x16x128xf32, #tpu.memory_space<vmem>>, vector<1x16x128xf32>,
    return
  }
  func.func @transform_0(%arg0: i32) -> (i32, i32, i32) {
    %c0_i32 = arith.constant 0 : i32
    %c0_i32_0 = arith.constant 0 : i32
    %c0_i32_1 = arith.constant 0 : i32
    return %arg0, %c0_i32, %c0_i32_0 : i32, i32, i32
  }
  func.func @transform_1(%arg0: i32) -> (i32, i32) {
    %c0_i32 = arith.constant 0 : i32
    %c0_i32_0 = arith.constant 0 : i32
    %c0_i32_1 = arith.constant 0 : i32
    return %c0_i32, %c0_i32_0 : i32, i32
  }
  func.func @transform_2(%arg0: i32) -> (i32, i32) {
    %c0_i32 = arith.constant 0 : i32
    %c0_i32_0 = arith.constant 0 : i32
    %c0_i32_1 = arith.constant 0 : i32
    return %c0_i32, %c0_i32_0 : i32, i32
  }
  func.func @transform_3(%arg0: i32) -> (i32, i32) {
    %c0_i32 = arith.constant 0 : i32
    %c0_i32_0 = arith.constant 0 : i32
    %c0_i32_1 = arith.constant 0 : i32
    return %c0_i32, %c0_i32_0 : i32, i32
  }
  func.func @transform_4(%arg0: i32) -> (i32, i32) {
    %c0_i32 = arith.constant 0 : i32
    %c0_i32_0 = arith.constant 0 : i32
    %c0_i32_1 = arith.constant 0 : i32
    return %c0_i32, %c0_i32_0 : i32, i32
  }
  func.func @transform_5(%arg0: i32) -> (i32, i32) {
    %c0_i32 = arith.constant 0 : i32
    %c0_i32_0 = arith.constant 0 : i32
    %c0_i32_1 = arith.constant 0 : i32
    return %c0_i32, %c0_i32_0 : i32, i32
  }
  func.func @transform_6(%arg0: i32) -> (i32, i32) {
    %c0_i32 = arith.constant 0 : i32
    %c0_i32_0 = arith.constant 0 : i32
    %c0_i32_1 = arith.constant 0 : i32
    return %c0_i32, %c0_i32_0 : i32, i32
  }
  func.func @transform_7(%arg0: i32) -> (i32, i32) {
    %c0_i32 = arith.constant 0 : i32
    %c0_i32_0 = arith.constant 0 : i32
    %c0_i32_1 = arith.constant 0 : i32
    return %c0_i32, %c0_i32_0 : i32, i32
  }
  func.func @transform_8(%arg0: i32) -> (i32, i32) {
    %c0_i32 = arith.constant 0 : i32
    %c0_i32_0 = arith.constant 0 : i32
    %c0_i32_1 = arith.constant 0 : i32
    return %c0_i32, %c0_i32_0 : i32, i32
  }
  func.func @transform_9(%arg0: i32) -> (i32, i32, i32) {
    %c0_i32 = arith.constant 0 : i32
    %c0_i32_0 = arith.constant 0 : i32
    %c0_i32_1 = arith.constant 0 : i32
    return %arg0, %c0_i32, %c0_i32_0 : i32, i32, i32
  }
}

</mosaic_0001>

<bundles_post_ra>
// kernel: tpu_custom_call.1
= control target key start
LH: loop header
LB: loop body
LE: loop exit
PB: predicated region body
PF: predicated region fallthrough
CT: control target
= control target key end

     0   :  { %14 = vsyncpa [#allocation3], 0  ;;  %s1873_s0 = inlined_call_operand.vmem [shape: bf16[1,32,128], index: 0, kind: input, shape index: {}]   ;;  %s1874_s1 = inlined_call_operand.hbm [shape: bf16[128,384], index: 1, kind: input, shape index: {}]   ;;  %s1875_s2 = inlined_call_operand.vmem [shape: f32[1,128], index: 2, kind: input, shape index: {}]   ;;  %s1876_s3 = inlined_call_operand.vmem [shape: f32[1,128], index: 3, kind: input, shape index: {}]   ;;  %s1877_s4 = inlined_call_operand.hbm [shape: bf16[128,384], index: 4, kind: input, shape index: {}]   ;;  %s1878_s5 = inlined_call_operand.vmem [shape: f32[1,128], index: 5, kind: input, shape index: {}]   ;;  %s1879_s6 = inlined_call_operand.vmem [shape: f32[1,128], index: 6, kind: input, shape index: {}]   ;;  %s1880_s7 = inlined_call_operand.vmem [shape: f32[32,1], index: 7, kind: input, shape index: {}]   ;;  %s1881_s8 = inlined_call_operand.vmem [shape: f32[32,1], index: 8, kind: input, shape index: {}]   ;;  %s1882_s9 = inlined_call_operand.hbm [shape: f32[1,16,128], index: 9, kind: output, shape index: {}]  }
   0x1   :  { %15 = vsyncpa [#allocation6], 0 }
   0x2   :  { %16 = vsyncpa [#allocation4], 0  ;;  %s1519_s30 = smov [#allocation2]   ;;  %s1447_s13 = scalar_lea.hbm %s1874_s1, 3072 }
   0x3   :  { %s24_s10 = sshll.u32 %s1519_s30, 4  ;;  %p1448_p0 = scmp.ne.s32.totalorder %s1874_s1, %s1447_s13  ;;  %s25_s10 = int_to_ptr.vmem [resolvable:$true] %s24_s10 }
   0x4   :  { %p1451_p1 = scmp.lt.u32.totalorder %s1447_s13, %s1874_s1 }
   0x6   :  { %p1453_p2 = pnand %p1451_p1, %p1448_p0 }
   0x8   :  { %1456 = shalt.err (!%p1453_p2)
}
   0x9   :  { %s1457_s18 = scalar_lea.vmem %s25_s10, 3072  ;;  %p1462_p4 = scmp.lt.s32.totalorder %s25_s10, %s25_s10 }
   0xa   :  { %p1458_p3 = scmp.ne.s32.totalorder %s25_s10, %s1457_s18  ;;  %p1463_p5 = scmp.lt.s32.totalorder %s1457_s18, %s1457_s18 }
   0xc   :  { %p1464_p6 = por %p1463_p5, %p1462_p4 }
   0xe   :  { %p1465_p7 = pnand %p1464_p6, %p1458_p3 }
  0x10   :  { %1468 = shalt.err (!%p1465_p7)
}
  0x11   :  { %s1520_s19 = smov 192   ;;  %s1521_s20 = smov 12  }
  0x12   :  { %30 = dma.hbm_to_vmem [thread:$0]  %s1874_s1, 3072, %s25_s10, [#allocation3], %s1520_s19, %s1520_s19, %s1521_s20  }
  0x13   :  { %s1522_s23 = smov [#allocation5]   ;;  %s1469_s27 = scalar_lea.hbm %s1877_s4, 3072 }
  0x14   :  { %s40_s24 = sshll.u32 %s1522_s23, 4  ;;  %p1470_p8 = scmp.ne.s32.totalorder %s1877_s4, %s1469_s27  ;;  %s41_s24 = int_to_ptr.vmem [resolvable:$true] %s40_s24 }
  0x15   :  { %p1473_p9 = scmp.lt.u32.totalorder %s1469_s27, %s1877_s4 }
  0x17   :  { %p1475_p10 = pnand %p1473_p9, %p1470_p8 }
  0x19   :  { %1478 = shalt.err (!%p1475_p10)
}
  0x1a   :  { %s1479_s12 = scalar_lea.vmem %s41_s24, 3072  ;;  %p1484_p12 = scmp.lt.s32.totalorder %s41_s24, %s41_s24 }
  0x1b   :  { %p1480_p11 = scmp.ne.s32.totalorder %s41_s24, %s1479_s12  ;;  %p1485_p13 = scmp.lt.s32.totalorder %s1479_s12, %s1479_s12 }
  0x1d   :  { %p1486_p0 = por %p1485_p13, %p1484_p12 }
  0x1f   :  { %p1487_p1 = pnand %p1486_p0, %p1480_p11 }
  0x21   :  { %1490 = shalt.err (!%p1487_p1)
}
  0x22   :  { %46 = dma.hbm_to_vmem [thread:$0]  %s1877_s4, 3072, %s41_s24, [#allocation6], %s1520_s19, %s1520_s19, %s1521_s20  }
  0x23   :  { %1513 = dma.done.wait [#allocation3], 3072  }
  0x24   :  { %1514 = vsyncadd [#allocation3], 4294964224 }
  0x25   :  { %1515 = dma.done.wait [#allocation6], 3072  }
  0x26   :  { %1516 = vsyncadd [#allocation6], 4294964224  ;;  %v1523_v0 = vmov 0   ;;  %v1381_v1 = vld [vmem:[#allocation2 + $0x4] ss:$12 sps:$4 sm:$0xff]   ;;  %v63_v26 = vld [vmem:[%s1880_s7 + $0x8] sm:$0xff]  ;;  %v352_v61 = vlaneseq }
  0x27   :  { %278 = vmatprep.mubr.bf16.mxu0 %v1523_v0  ;;  %1379 = vset.pattern.permute.xlu0 %v1523_v0  ;;  %v1383_v2 = vld [vmem:[#allocation2] ss:$12 sps:$4 sm:$0xff]   ;;  %v1384_v3 = vld [vmem:[#allocation2 + $0x8] ss:$12 sps:$4 sm:$0xff]   ;;  %v1387_v5 = vld [vmem:[#allocation2 + $0x18] ss:$12 sps:$4 sm:$0xff]  }
  0x28   :  { %1380 = vset.pattern.permute.xlu1 %v1523_v0  ;;  %246 = vmatprep.subr.bf16.mxu0 %v1381_v1  ;;  %v1385_v4 = vld [vmem:[#allocation2 + $0x1c] ss:$12 sps:$4 sm:$0xff]   ;;  %v1388_v6 = vld [vmem:[#allocation2 + $0x20] ss:$12 sps:$4 sm:$0xff]   ;;  %v1392_v8 = vld [vmem:[#allocation2 + $0x38] ss:$12 sps:$4 sm:$0xff]  }
  0x29   :  { %247 = vmatpush1.bf16.msra.mxu0 %v1383_v2  ;;  %1329 = vmatprep.subr.bf16.mxu1 %v1384_v3  ;;  %v1389_v7 = vld [vmem:[#allocation2 + $0x34] ss:$12 sps:$4 sm:$0xff]   ;;  %v1391_v9 = vld [vmem:[#allocation2 + $0x30] ss:$12 sps:$4 sm:$0xff]   ;;  %v1393_v10 = vld [vmem:[#allocation2 + $0x4c] ss:$12 sps:$4 sm:$0xff]  }
  0x2a   :  { %1330 = vmatpush3.bf16.msra.mxu1 %v1384_v3  ;;  %248 = vmatprep.subr.bf16.mxu0 %v1385_v4  ;;  %v1396_v11 = vld [vmem:[#allocation2 + $0x50] ss:$12 sps:$4 sm:$0xff]   ;;  %v1395_v12 = vld [vmem:[#allocation2 + $0x48] ss:$12 sps:$4 sm:$0xff]   ;;  %v1399_v15 = vld [vmem:[#allocation2 + $0x60] ss:$12 sps:$4 sm:$0xff]  }
  0x2b   :  { %1331 = vmatprep.subr.bf16.mxu1 %v1388_v6  ;;  %v1397_v13 = vld [vmem:[#allocation2 + $0x64] ss:$12 sps:$4 sm:$0xff]   ;;  %v1400_v14 = vld [vmem:[#allocation2 + $0x68] ss:$12 sps:$4 sm:$0xff]   ;;  %v1404_v18 = vld [vmem:[#allocation2 + $0x80] ss:$12 sps:$4 sm:$0xff]  }
  0x2c   :  { %v1401_v16 = vld [vmem:[#allocation2 + $0x7c] ss:$12 sps:$4 sm:$0xff]   ;;  %v1403_v17 = vld [vmem:[#allocation2 + $0x78] ss:$12 sps:$4 sm:$0xff]   ;;  %v1405_v20 = vld [vmem:[#allocation2 + $0x94] ss:$12 sps:$4 sm:$0xff]  }
  0x2d   :  { %249 = vmatpush1.bf16.msra.mxu0 %v1387_v5  ;;  %v1413_v19 = vld [vmem:[%s1873_s0] sm:$0xff]   ;;  %v1407_v23 = vld [vmem:[#allocation2 + $0x90] ss:$12 sps:$4 sm:$0xff]   ;;  %v1409_v25 = vld [vmem:[#allocation2 + $0xac] ss:$12 sps:$4 sm:$0xff]   ;;  %v1642_v62 = vshrl.u32 %v352_v61, 7 }
  0x2e   :  { %250 = vmatprep.subr.bf16.mxu0 %v1389_v7  ;;  %1332 = vmatpush3.bf16.msra.mxu1 %v1388_v6  ;;  %v62_v21 = vld [vmem:[%s1880_s7] sm:$0xff]  ;;  %v1412_v27 = vld [vmem:[#allocation2 + $0xb0] ss:$12 sps:$4 sm:$0xff]   ;;  %v67_v28 = vld [vmem:[%s1881_s8 + $0x8] sm:$0xff]  ;;  %vm1004_vm2 = vcmask 1041409   ;;  %vm1006_vm3 = vcmask 1042434  }
  0x2f   :  { %1333 = vmatprep.subr.bf16.mxu1 %v1392_v8  ;;  %1345 = vmatprep.mubr.bf16.mxu1 %v1413_v19  ;;  %v66_v22 = vld [vmem:[%s1881_s8] sm:$0xff]  ;;  %v1411_v29 = vld [vmem:[#allocation2 + $0xa8] ss:$12 sps:$4 sm:$0xff]   ;;  %v65_v31 = vld [vmem:[%s1880_s7 + $0x18] sm:$0xff]  ;;  %vm354_vm0 = vcmp.lt.s32.totalorder %v1642_v62, 1  ;;  %vm391_vm1 = vcmp.lt.s32.totalorder %v1642_v62, 7 }
  0x30   :  { %v1408_v24 = vld [vmem:[#allocation2 + $0x98] ss:$12 sps:$4 sm:$0xff]   ;;  %361 = vperm.xlu0 %1379, %v62_v21   ;;  %398 = vperm.xlu1 %1380, %v66_v22   ;;  %v64_v30 = vld [vmem:[%s1880_s7 + $0x10] sm:$0xff]  ;;  %v1414_v34 = vld [vmem:[%s1873_s0 + $0x8] sm:$0xff]   ;;  %vm1008_vm4 = vcmask 1043459   ;;  %vm1010_vm5 = vcmask 1044484  }
  0x31   :  { %251 = vmatpush1.bf16.msra.mxu0 %v1391_v9  ;;  %v1417_v32 = vld [vmem:[#allocation5 + $0x4] ss:$12 sps:$4 sm:$0xff]   ;;  %v69_v35 = vld [vmem:[%s1881_s8 + $0x18] sm:$0xff]  ;;  %v1415_v36 = vld [vmem:[#allocation5] ss:$12 sps:$4 sm:$0xff]   ;;  %vm1012_vm6 = vcmask 1045509  }
  0x32   :  { %252 = vmatprep.subr.bf16.mxu0 %v1393_v10  ;;  %1334 = vmatpush3.bf16.msra.mxu1 %v1392_v8  ;;  %v68_v33 = vld [vmem:[%s1881_s8 + $0x10] sm:$0xff]  ;;  %v1421_v38 = vld [vmem:[#allocation5 + $0x1c] ss:$12 sps:$4 sm:$0xff]   ;;  %v1419_v39 = vld [vmem:[#allocation5 + $0x18] ss:$12 sps:$4 sm:$0xff]   ;;  %vm1014_vm7 = vcmask 1046534  }
  0x33   :  { %1335 = vmatprep.subr.bf16.mxu1 %v1396_v11  ;;  %v1418_v37 = vld [vmem:[#allocation5 + $0x8] ss:$12 sps:$4 sm:$0xff]   ;;  %v1422_v40 = vld [vmem:[#allocation5 + $0x20] ss:$12 sps:$4 sm:$0xff]   ;;  %v1423_v42 = vld [vmem:[#allocation5 + $0x30] ss:$12 sps:$4 sm:$0xff]  }
  0x34   :  { %366 = vperm.xlu0 %1379, %v63_v26   ;;  %403 = vperm.xlu1 %1380, %v67_v28   ;;  %v1425_v41 = vld [vmem:[#allocation5 + $0x34] ss:$12 sps:$4 sm:$0xff]   ;;  %v1426_v43 = vld [vmem:[#allocation5 + $0x38] ss:$12 sps:$4 sm:$0xff]   ;;  %v1430_v46 = vld [vmem:[#allocation5 + $0x50] ss:$12 sps:$4 sm:$0xff]  }
  0x35   :  { %253 = vmatpush1.bf16.msra.mxu0 %v1395_v12  ;;  %v1429_v44 = vld [vmem:[#allocation5 + $0x4c] ss:$12 sps:$4 sm:$0xff]   ;;  %v1427_v45 = vld [vmem:[#allocation5 + $0x48] ss:$12 sps:$4 sm:$0xff]   ;;  %v1433_v47 = vld [vmem:[#allocation5 + $0x64] ss:$12 sps:$4 sm:$0xff]  }
  0x36   :  { %254 = vmatprep.subr.bf16.mxu0 %v1397_v13  ;;  %1336 = vmatpush3.bf16.msra.mxu1 %v1396_v11  ;;  %v1431_v48 = vld [vmem:[#allocation5 + $0x60] ss:$12 sps:$4 sm:$0xff]   ;;  %v1434_v49 = vld [vmem:[#allocation5 + $0x68] ss:$12 sps:$4 sm:$0xff]   ;;  %v1435_v51 = vld [vmem:[#allocation5 + $0x78] ss:$12 sps:$4 sm:$0xff]  }
  0x37   :  { %1337 = vmatprep.subr.bf16.mxu1 %v1400_v14  ;;  %v1437_v50 = vld [vmem:[#allocation5 + $0x7c] ss:$12 sps:$4 sm:$0xff]   ;;  %v1438_v52 = vld [vmem:[#allocation5 + $0x80] ss:$12 sps:$4 sm:$0xff]   ;;  %v1442_v55 = vld [vmem:[#allocation5 + $0x98] ss:$12 sps:$4 sm:$0xff]  }
  0x38   :  { %371 = vperm.xlu0 %1379, %v64_v30   ;;  %376 = vperm.xlu1 %1380, %v65_v31   ;;  %v1441_v53 = vld [vmem:[#allocation5 + $0x94] ss:$12 sps:$4 sm:$0xff]   ;;  %v1439_v54 = vld [vmem:[#allocation5 + $0x90] ss:$12 sps:$4 sm:$0xff]   ;;  %v1445_v56 = vld [vmem:[#allocation5 + $0xac] ss:$12 sps:$4 sm:$0xff]  }
  0x39   :  { %255 = vmatpush1.bf16.msra.mxu0 %v1399_v15  ;;  %v1443_v57 = vld [vmem:[#allocation5 + $0xa8] ss:$12 sps:$4 sm:$0xff]   ;;  %v1446_v58 = vld [vmem:[#allocation5 + $0xb0] ss:$12 sps:$4 sm:$0xff]   ;;  %vm1016_vm8 = vcmask 1047559  }
  0x3a   :  { %256 = vmatprep.subr.bf16.mxu0 %v1401_v16  ;;  %1338 = vmatpush3.bf16.msra.mxu1 %v1400_v14 }
  0x3b   :  { %1339 = vmatprep.subr.bf16.mxu1 %v1404_v18 }
  0x3c   :  { %408 = vperm.xlu0 %1379, %v68_v33   ;;  %413 = vperm.xlu1 %1380, %v69_v35  }
  0x3d   :  { %257 = vmatpush1.bf16.msra.mxu0 %v1403_v17 }
  0x3e   :  { %258 = vmatprep.subr.bf16.mxu0 %v1405_v20  ;;  %1340 = vmatpush3.bf16.msra.mxu1 %v1404_v18 }
  0x3f   :  { %1341 = vmatprep.subr.bf16.mxu1 %v1408_v24 }
  0x41   :  { %259 = vmatpush1.bf16.msra.mxu0 %v1407_v23 }
  0x42   :  { %260 = vmatprep.subr.bf16.mxu0 %v1409_v25  ;;  %1342 = vmatpush3.bf16.msra.mxu1 %v1408_v24 }
  0x43   :  { %1343 = vmatprep.subr.bf16.mxu1 %v1412_v27 }
  0x45   :  { %261 = vmatpush1.bf16.msra.mxu0 %v1411_v29 }
  0x46   :  { %612 = vmatprep.subr.bf16.mxu0 %v1417_v32  ;;  %1344 = vmatpush3.bf16.msra.mxu1 %v1412_v27 }
  0x47   :  { %1349 = vmatprep.subr.bf16.mxu1 %v1418_v37 }
  0x48   :  { %279 = vmatmul.mubr.bf16.vlgmr.msra.gmra.mrb[0].mxu0 %v1413_v19 }
  0x49   :  { %288 = vmatprep.mubr.bf16.mxu0 %v1523_v0  ;;  %1346 = vmatmul.mubr.bf16.vlgmr.msra.gmra.mrb[0].mxu1 %v1414_v34 }
  0x4a   :  { %613 = vmatpush1.bf16.msra.mxu0 %v1415_v36  ;;  %1350 = vmatpush3.bf16.msra.mxu1 %v1418_v37  ;;  %v1265_v37 = vld [vmem:[%s1875_s2] ss:$0 sm:$0xff] }
  0x4b   :  { %614 = vmatprep.subr.bf16.mxu0 %v1421_v38  ;;  %1351 = vmatprep.subr.bf16.mxu1 %v1422_v40 }
  0x4e   :  { %615 = vmatpush1.bf16.msra.mxu0 %v1419_v39  ;;  %1352 = vmatpush3.bf16.msra.mxu1 %v1422_v40 }
  0x4f   :  { %616 = vmatprep.subr.bf16.mxu0 %v1425_v41  ;;  %1353 = vmatprep.subr.bf16.mxu1 %v1426_v43 }
  0x50   :  { %289 = vmatmul.mubr.bf16.gmra.mrb[4].mxu0 %v1414_v34 }
  0x51   :  { %644 = vmatprep.mubr.bf16.mxu0 %v1523_v0 }
  0x52   :  { %617 = vmatpush1.bf16.msra.mxu0 %v1423_v42  ;;  %1354 = vmatpush3.bf16.msra.mxu1 %v1426_v43 }
  0x53   :  { %618 = vmatprep.subr.bf16.mxu0 %v1429_v44  ;;  %1355 = vmatprep.subr.bf16.mxu1 %v1430_v46 }
  0x56   :  { %619 = vmatpush1.bf16.msra.mxu0 %v1427_v45  ;;  %1356 = vmatpush3.bf16.msra.mxu1 %v1430_v46 }
  0x57   :  { %620 = vmatprep.subr.bf16.mxu0 %v1433_v47  ;;  %1357 = vmatprep.subr.bf16.mxu1 %v1434_v49 }
  0x5a   :  { %621 = vmatpush1.bf16.msra.mxu0 %v1431_v48  ;;  %1358 = vmatpush3.bf16.msra.mxu1 %v1434_v49 }
  0x5b   :  { %622 = vmatprep.subr.bf16.mxu0 %v1437_v50  ;;  %1359 = vmatprep.subr.bf16.mxu1 %v1438_v52  ;;  %v1266_v50 = vld [vmem:[%s1876_s3] ss:$0 sm:$0xff] }
  0x5e   :  { %623 = vmatpush1.bf16.msra.mxu0 %v1435_v51  ;;  %1360 = vmatpush3.bf16.msra.mxu1 %v1438_v52 }
  0x5f   :  { %624 = vmatprep.subr.bf16.mxu0 %v1441_v53  ;;  %1361 = vmatprep.subr.bf16.mxu1 %v1442_v55 }
  0x62   :  { %625 = vmatpush1.bf16.msra.mxu0 %v1439_v54  ;;  %1362 = vmatpush3.bf16.msra.mxu1 %v1442_v55 }
  0x63   :  { %626 = vmatprep.subr.bf16.mxu0 %v1445_v56  ;;  %1363 = vmatprep.subr.bf16.mxu1 %v1446_v58 }
  0x66   :  { %627 = vmatpush1.bf16.msra.mxu0 %v1443_v57  ;;  %1364 = vmatpush3.bf16.msra.mxu1 %v1446_v58 }
  0xaf   :  { %v1638_v59 = vpop.permute.xlu0 %361  ;;  %v1640_v60 = vpop.permute.xlu1 %398 }
  0xb3   :  { %v1644_v63 = vpop.permute.xlu0 %366  ;;  %v1646_v2 = vpop.permute.xlu1 %403 }
  0xb7   :  { %v1652_v16 = vpop.permute.xlu0 %371  ;;  %v1655_v19 = vpop.permute.xlu1 %376 }
  0xbb   :  { %v1668_v32 = vpop.permute.xlu0 %408  ;;  %v1671_v36 = vpop.permute.xlu1 %413 }
 0x11b   :  { %v280_v1 = vpop.f32.mrb[0].mxu0 }
 0x11c   :  { %v282_v3 = vpop.f32.mrb[1].mxu0  ;;  %v1347_v4 = vpop.f32.mrb[0].mxu1  ;;  %v348_v6 = vrot.slane %v280_v1, 7 }
 0x11d   :  { %v284_v5 = vpop.f32.mrb[2].mxu0  ;;  %v333_v8 = vpop.f32.mrb[1].mxu1  ;;  %v389_v10 = vrot.slane %v1347_v4, 1 }
 0x11e   :  { %v349_v7 = vrot.slane %v284_v5, 7  ;;  %v286_v9 = vpop.f32.mrb[3].mxu0  ;;  %v387_v11 = vrot.slane %v333_v8, 1  ;;  %v1348_v12 = vpop.f32.mrb[2].mxu1 }
 0x11f   :  { %v390_v14 = vrot.slane %v1348_v12, 1  ;;  %v336_v15 = vpop.f32.mrb[3].mxu1 }
 0x120   :  { %v357_v13 = vsel %vm354_vm0, %v348_v6, %v349_v7  ;;  %v388_v18 = vrot.slane %v336_v15, 1 }
 0x121   :  { %v380_v17 = vmul.f32 %v1644_v63, %v357_v13  ;;  %v392_v20 = vsel %vm391_vm1, %v389_v10, %v390_v14  ;;  %v395_v21 = vsel %vm391_vm1, %v390_v14, %v387_v11 }
 0x122   :  { %v393_v23 = vsel %vm391_vm1, %v388_v18, %v389_v10  ;;  %v394_v24 = vsel %vm391_vm1, %v387_v11, %v388_v18  ;;  %v418_v41 = vmul.f32 %v1668_v32, %v392_v20  ;;  %v419_v45 = vmul.f32 %v1671_v36, %v395_v21 }
 0x123   :  { %v384_v22 = vadd.f32 %v380_v17, %v286_v9  ;;  %v290_v25 = vpop.f32.mrb[4].mxu0  ;;  %v417_v26 = vmul.f32 %v1646_v2, %v393_v23  ;;  %v416_v44 = vmul.f32 %v1640_v60, %v394_v24  ;;  %v1524_v23 = vmov 1983009808  }
 0x124   :  { %v350_v27 = vrot.slane %v290_v25, 7  ;;  %v292_v28 = vpop.f32.mrb[5].mxu0  ;;  %v778_v24 = vunpack.c.l.s4 %v1524_v23 }
 0x125   :  { %v294_v29 = vpop.f32.mrb[6].mxu0  ;;  %v421_v30 = vadd.f32 %v417_v26, %v384_v22 }
 0x126   :  { %v356_v31 = vsel %vm354_vm0, %v349_v7, %v350_v27  ;;  %v351_v33 = vrot.slane %v294_v29, 7  ;;  %v296_v34 = vpop.f32.mrb[7].mxu0 }
 0x127   :  { %v381_v35 = vmul.f32 %v1652_v16, %v356_v31  ;;  %v432_v46 = vmul.f32 %v1265_v37, %v421_v30 }
 0x128   :  { %v358_v38 = vsel %vm354_vm0, %v351_v33, %v348_v6  ;;  %v355_v39 = vsel %vm354_vm0, %v350_v27, %v351_v33 }
 0x129   :  { %v385_v40 = vadd.f32 %v381_v35, %v292_v28  ;;  %v379_v42 = vmul.f32 %v1638_v59, %v358_v38  ;;  %v382_v43 = vmul.f32 %v1655_v19, %v355_v39  ;;  %v443_v57 = vadd.f32 %v1266_v50, %v432_v46 }
 0x12a   :  { %v779_v35 = vunpack.c.0.s8 %v778_v24 }
 0x12b   :  { %v422_v47 = vadd.f32 %v418_v41, %v385_v40  ;;  %v383_v48 = vadd.f32 %v379_v42, %v282_v3  ;;  %v386_v49 = vadd.f32 %v382_v43, %v296_v34  ;;  %v447_v6 = vmax.f32 %v443_v57, 0.0  ;;  %v1292_v42 = vld [vmem:[%s1879_s6] ss:$0 sm:$0xff]  ;;  %s1526_s6 = smov [#allocation7]  }
 0x12c   :  { %v1711_v46 = vsub.s32 %v779_v35, %v1642_v62  ;;  %s1226_s4 = sshll.u32 %s1526_s6, 4  ;;  %s1227_s4 = int_to_ptr.vmem [resolvable:$true] %s1226_s4 }
 0x12d   :  { %v433_v51 = vmul.f32 %v1265_v37, %v422_v47  ;;  %v420_v52 = vadd.f32 %v416_v44, %v383_v48  ;;  %v423_v53 = vadd.f32 %v419_v45, %v386_v49  ;;  %s1491_s13 = scalar_lea.vmem %s1227_s4, 256  ;;  %p1496_p3 = scmp.lt.s32.totalorder %s1227_s4, %s1227_s4 }
 0x12e   :  { %p1492_p2 = scmp.ne.s32.totalorder %s1227_s4, %s1491_s13  ;;  %p1497_p4 = scmp.lt.s32.totalorder %s1491_s13, %s1491_s13 }
 0x12f   :  { %v444_v54 = vadd.f32 %v1266_v50, %v433_v51  ;;  %v431_v55 = vmul.f32 %v1265_v37, %v420_v52  ;;  %v434_v56 = vmul.f32 %v1265_v37, %v423_v53 }
 0x130   :  { %p1498_p5 = por %p1497_p4, %p1496_p3 }
 0x131   :  { %v442_v58 = vadd.f32 %v1266_v50, %v431_v55  ;;  %v445_v61 = vadd.f32 %v1266_v50, %v434_v56  ;;  %v448_v1 = vmax.f32 %v444_v54, 0.0 }
 0x132   :  { %p1499_p6 = pnand %p1498_p5, %p1492_p2 }
 0x133   :  { %v449_v4 = vmax.f32 %v445_v61, 0.0  ;;  %v446_v5 = vmax.f32 %v442_v58, 0.0 }
 0x135   :  { %v450_v7 = vpack.c.bf16 %v447_v6, %v446_v5  ;;  %v451_v3 = vpack.c.bf16 %v449_v4, %v448_v1 }
 0x137   :  { %645 = vmatmul.mubr.bf16.vlgmr.msra.gmra.mrb[8].mxu0 %v450_v7  ;;  %1365 = vmatprep.mubr.bf16.mxu1 %v450_v7 }
 0x138   :  { %1366 = vmatmul.mubr.bf16.vlgmr.msra.gmra.mrb[4].mxu1 %v451_v3  ;;  %654 = vmatprep.mubr.bf16.mxu0 %v1523_v0 }
 0x13f   :  { %655 = vmatmul.mubr.bf16.gmra.mrb[12].mxu0 %v451_v3 }
 0x20a   :  { %v646_v8 = vpop.f32.mrb[8].mxu0 }
 0x20b   :  { %v648_v9 = vpop.f32.mrb[9].mxu0  ;;  %v1367_v10 = vpop.f32.mrb[4].mxu1  ;;  %v714_v13 = vrot.slane %v646_v8, 7 }
 0x20c   :  { %v650_v11 = vpop.f32.mrb[10].mxu0  ;;  %v699_v12 = vpop.f32.mrb[5].mxu1  ;;  %v732_v20 = vrot.slane %v1367_v10, 1 }
 0x20d   :  { %v715_v14 = vrot.slane %v650_v11, 7  ;;  %v730_v15 = vrot.slane %v699_v12, 1  ;;  %v652_v17 = vpop.f32.mrb[11].mxu0  ;;  %v1368_v18 = vpop.f32.mrb[6].mxu1 }
 0x20e   :  { %v733_v21 = vrot.slane %v1368_v18, 1  ;;  %v702_v22 = vpop.f32.mrb[7].mxu1 }
 0x20f   :  { %v720_v25 = vsel %vm354_vm0, %v714_v13, %v715_v14  ;;  %v731_v0 = vrot.slane %v702_v22, 1 }
 0x210   :  { %v723_v26 = vmul.f32 %v720_v25, %v1644_v63  ;;  %v734_v27 = vsel %vm391_vm1, %v732_v20, %v733_v21  ;;  %v737_v28 = vsel %vm391_vm1, %v733_v21, %v730_v15  ;;  %v1291_v63 = vld [vmem:[%s1878_s5] ss:$0 sm:$0xff]  ;;  %s1525_s5 = smov 120  }
 0x211   :  { %v735_v29 = vsel %vm391_vm1, %v731_v0, %v732_v20  ;;  %v736_v30 = vsel %vm391_vm1, %v730_v15, %v731_v0  ;;  %v740_v47 = vmul.f32 %v734_v27, %v1668_v32  ;;  %v741_v54 = vmul.f32 %v737_v28, %v1671_v36 }
 0x212   :  { %v727_v31 = vadd.f32 %v723_v26, %v652_v17  ;;  %v739_v33 = vmul.f32 %v735_v29, %v1646_v2  ;;  %v656_v34 = vpop.f32.mrb[12].mxu0 }
 0x213   :  { %v716_v37 = vrot.slane %v656_v34, 7  ;;  %v658_v38 = vpop.f32.mrb[13].mxu0 }
 0x214   :  { %v743_v39 = vadd.f32 %v739_v33, %v727_v31  ;;  %v660_v40 = vpop.f32.mrb[14].mxu0 }
 0x215   :  { %v719_v41 = vsel %vm354_vm0, %v715_v14, %v716_v37  ;;  %v717_v43 = vrot.slane %v660_v40, 7  ;;  %v662_v44 = vpop.f32.mrb[15].mxu0 }
 0x216   :  { %v724_v2 = vmul.f32 %v719_v41, %v1652_v16  ;;  %v754_v45 = vmul.f32 %v1291_v63, %v743_v39  ;;  %v738_v16 = vmul.f32 %v736_v30, %v1640_v60 }
 0x217   :  { %v721_v48 = vsel %vm354_vm0, %v717_v43, %v714_v13  ;;  %v718_v49 = vsel %vm354_vm0, %v716_v37, %v717_v43 }
 0x218   :  { %v728_v50 = vadd.f32 %v724_v2, %v658_v38  ;;  %v765_v51 = vadd.f32 %v1292_v42, %v754_v45  ;;  %v722_v52 = vmul.f32 %v721_v48, %v1638_v59  ;;  %v725_v53 = vmul.f32 %v718_v49, %v1655_v19 }
 0x21a   :  { %v744_v55 = vadd.f32 %v740_v47, %v728_v50  ;;  %v769_v56 = vmax.f32 %v765_v51, 0.0  ;;  %v726_v57 = vadd.f32 %v722_v52, %v648_v9  ;;  %v729_v32 = vadd.f32 %v725_v53, %v662_v44 }
 0x21b   :  { %v1729_v9 = vsub.s32 0, %v1642_v62 }
 0x21c   :  { %v755_v58 = vmul.f32 %v1291_v63, %v744_v55  ;;  %v800_v61 = vrot.slane %v769_v56, %v1711_v46  ;;  %v742_v1 = vadd.f32 %v738_v16, %v726_v57  ;;  %v745_v4 = vadd.f32 %v741_v54, %v729_v32 }
 0x21d   :  { %v793_v5 = vcombine.high %v769_v56, %v769_v56 }
 0x21e   :  { %v766_v6 = vadd.f32 %v1292_v42, %v755_v58  ;;  %v753_v7 = vmul.f32 %v1291_v63, %v742_v1  ;;  %v756_v3 = vmul.f32 %v1291_v63, %v745_v4  ;;  %v1726_v19 = vcombine.high %v800_v61, %v800_v61 }
 0x21f   :  { %v1724_v59 = vrot.slane %v793_v5, %v1711_v46  ;;  %v1297_v10 = vrot.slane %v800_v61, 9 }
 0x220   :  { %v770_v60 = vmax.f32 %v766_v6, 0.0  ;;  %v764_v36 = vadd.f32 %v1292_v42, %v753_v7  ;;  %v767_v8 = vadd.f32 %v1292_v42, %v756_v3  ;;  %v1298_v17 = vrot.slane %v1726_v19, 9 }
 0x221   :  { %v1734_v15 = vcombine.high %v1724_v59, %v1724_v59  ;;  %v1299_v18 = vrot.slane %v1724_v59, 9  ;;  %v1741_v0 = vadd.f32 %v1297_v10, %v800_v61 }
 0x222   :  { %v810_v11 = vcombine.high %v770_v60, %v770_v60  ;;  %v817_v12 = vrot.slane %v770_v60, %v1711_v46  ;;  %v768_v13 = vmax.f32 %v764_v36, 0.0  ;;  %v771_v14 = vmax.f32 %v767_v8, 0.0 }
 0x223   :  { %v1300_v1 = vrot.slane %v1734_v15, 9  ;;  %v1779_v8 = vadd.f32 %v1298_v17, %v1726_v19 }
 0x224   :  { %v824_v62 = vrot.slane %v810_v11, %v1711_v46  ;;  %v825_v20 = vcombine.high %v817_v12, %v817_v12  ;;  %v1301_v21 = vrot.slane %v817_v12, 9  ;;  %v776_v22 = vcombine.high %v768_v13, %v768_v13 }
 0x225   :  { %v783_v23 = vrot.slane %v768_v13, %v1711_v46  ;;  %v827_v24 = vcombine.high %v771_v14, %v771_v14  ;;  %v834_v25 = vrot.slane %v771_v14, %v1711_v46 }
 0x226   :  { %v826_v26 = vcombine.high %v824_v62, %v824_v62  ;;  %v1302_v27 = vrot.slane %v825_v20, 9  ;;  %v1303_v28 = vrot.slane %v824_v62, 9  ;;  %v1743_v29 = vadd.f32 %v1301_v21, %v817_v12 }
 0x227   :  { %v790_v30 = vrot.slane %v776_v22, %v1711_v46  ;;  %v791_v31 = vcombine.high %v783_v23, %v783_v23  ;;  %v1293_v33 = vrot.slane %v783_v23, 9  ;;  %v841_v34 = vrot.slane %v827_v24, %v1711_v46 }
 0x228   :  { %v1304_v35 = vrot.slane %v826_v26, 9  ;;  %v1747_v37 = vadd.f32 %v1302_v27, %v825_v20  ;;  %v1749_v38 = vadd.f32 %v1303_v28, %v824_v62  ;;  %v975_v63 = vrot.slane %v1743_v29, %v1729_v9 }
 0x229   :  { %v1294_v39 = vrot.slane %v791_v31, 9  ;;  %v1753_v40 = vadd.f32 %v1293_v33, %v783_v23  ;;  %v842_v41 = vcombine.high %v834_v25, %v834_v25  ;;  %v1305_v42 = vrot.slane %v834_v25, 9 }
 0x22a   :  { %v979_v43 = vrot.slane %v1747_v37, %v1729_v9  ;;  %v843_v44 = vcombine.high %v841_v34, %v841_v34  ;;  %v1307_v2 = vrot.slane %v841_v34, 9  ;;  %v1757_v45 = vadd.f32 %v1304_v35, %v826_v26 }
 0x22b   :  { %v920_v47 = vadd.f32 %v1305_v42, %v834_v25  ;;  %v1306_v48 = vrot.slane %v842_v41, 9  ;;  %v983_v49 = vrot.slane %v1749_v38, %v1729_v9  ;;  %v792_v50 = vcombine.high %v790_v30, %v790_v30 }
 0x22c   :  { %v1308_v51 = vrot.slane %v843_v44, 9  ;;  %v922_v52 = vadd.f32 %v1307_v2, %v841_v34  ;;  %v987_v53 = vrot.slane %v1757_v45, %v1729_v9  ;;  %v1018_v16 = vsel %vm1004_vm2, %v979_v43, %v975_v63 }
 0x22d   :  { %v921_v54 = vadd.f32 %v1306_v48, %v842_v41  ;;  %v991_v55 = vrot.slane %v920_v47, %v1729_v9  ;;  %v1019_v56 = vsel %vm1006_vm3, %v983_v49, %v1018_v16  ;;  %v1295_v57 = vrot.slane %v790_v30, 9 }
 0x22e   :  { %v923_v32 = vadd.f32 %v1308_v51, %v843_v44  ;;  %v1020_v58 = vsel %vm1008_vm4, %v987_v53, %v1019_v56  ;;  %v1296_v61 = vrot.slane %v792_v50, 9  ;;  %v1770_v6 = vadd.f32 %v1294_v39, %v791_v31 }
 0x22f   :  { %v995_v4 = vrot.slane %v921_v54, %v1729_v9  ;;  %v1021_v5 = vsel %vm1010_vm5, %v991_v55, %v1020_v58  ;;  %v1772_v7 = vadd.f32 %v1295_v57, %v790_v30  ;;  %v999_v3 = vrot.slane %v922_v52, %v1729_v9 }
 0x230   :  { %v1003_v60 = vrot.slane %v923_v32, %v1729_v9  ;;  %v1776_v36 = vadd.f32 %v1296_v61, %v792_v50  ;;  %v943_v11 = vrot.slane %v1753_v40, %v1729_v9  ;;  %v947_v12 = vrot.slane %v1770_v6, %v1729_v9 }
 0x231   :  { %v1022_v10 = vsel %vm1012_vm6, %v995_v4, %v1021_v5  ;;  %v951_v13 = vrot.slane %v1772_v7, %v1729_v9  ;;  %v1792_v62 = vadd.f32 %v1299_v18, %v1724_v59  ;;  %v1798_v20 = vadd.f32 %v1300_v1, %v1734_v15 }
 0x232   :  { %v1023_v14 = vsel %vm1014_vm7, %v999_v3, %v1022_v10  ;;  %v955_v19 = vrot.slane %v1776_v36, %v1729_v9  ;;  %v1005_v21 = vsel %vm1004_vm2, %v947_v12, %v943_v11  ;;  %v959_v22 = vrot.slane %v1741_v0, %v1729_v9 }
 0x233   :  { %v1024_v17 = vsel %vm1016_vm8, %v1003_v60, %v1023_v14  ;;  %v1007_v23 = vsel %vm1006_vm3, %v951_v13, %v1005_v21  ;;  %v963_v59 = vrot.slane %v1779_v8, %v1729_v9  ;;  %v967_v24 = vrot.slane %v1792_v62, %v1729_v9 }
 0x234   :  { %1029 = vrot.lane.b32.xlu1 %v1024_v17, %s1525_s5  ;;  %v1009_v18 = vsel %vm1008_vm4, %v955_v19, %v1007_v23  ;;  %v971_v25 = vrot.slane %v1798_v20, %v1729_v9 }
 0x235   :  { %v1011_v15 = vsel %vm1010_vm5, %v959_v22, %v1009_v18 }
 0x236   :  { %v1013_v26 = vsel %vm1012_vm6, %v963_v59, %v1011_v15 }
 0x237   :  { %v1015_v27 = vsel %vm1014_vm7, %v967_v24, %v1013_v26 }
 0x238   :  { %v1017_v28 = vsel %vm1016_vm8, %v971_v25, %v1015_v27 }
 0x239   :  { %1027 = vrot.lane.b32.xlu0 %v1017_v28, %s1525_s5 }
 0x2a6   :  { %v1030_v30 = vpop.permute.xlu1 %1029 }
 0x2a7   :  { %v1050_v31 = vcombine.high %v1030_v30, %v1030_v30  ;;  %v1057_v33 = vrot.slane %v1030_v30, %v1711_v46 }
 0x2a9   :  { %v1064_v34 = vrot.slane %v1050_v31, %v1711_v46  ;;  %v1065_v35 = vcombine.high %v1057_v33, %v1057_v33  ;;  %v1071_v63 = vrot.slane %v1057_v33, 1  ;;  %v1099_v39 = vadd.f32 %v1057_v33, %v1743_v29 }
 0x2ab   :  { %v1066_v41 = vcombine.high %v1064_v34, %v1064_v34  ;;  %v1072_v42 = vrot.slane %v1065_v35, 1  ;;  %v1073_v43 = vrot.slane %v1064_v34, 1  ;;  %v1100_v44 = vadd.f32 %v1071_v63, %v1747_v37  ;;  %v1028_v53 = vpop.permute.xlu0 %1027 }
 0x2ac   :  { %v1101_v2 = vadd.f32 %v1065_v35, %v1749_v38  ;;  %v1103_v48 = vadd.f32 %v1064_v34, %v920_v47  ;;  %v1115_v49 = vmul.f32 0.25, %v1099_v39  ;;  %v1033_v4 = vcombine.high %v1028_v53, %v1028_v53 }
 0x2ad   :  { %v1074_v50 = vrot.slane %v1066_v41, 1  ;;  %v1102_v51 = vadd.f32 %v1072_v42, %v1757_v45  ;;  %v1116_v16 = vmul.f32 0.25, %v1100_v44  ;;  %v1104_v56 = vadd.f32 %v1073_v43, %v921_v54 }
 0x2ae   :  { %v1117_v55 = vmul.f32 0.25, %v1101_v2  ;;  %v1105_v57 = vadd.f32 %v1066_v41, %v922_v52  ;;  %v1119_v61 = vmul.f32 0.25, %v1103_v48  ;;  %v1174_v29 = vrot.slane %v1115_v49, %v1729_v9 }
 0x2af   :  { %v1118_v58 = vmul.f32 0.25, %v1102_v51  ;;  %v1178_v1 = vrot.slane %v1116_v16, %v1729_v9  ;;  %v1106_v38 = vadd.f32 %v1074_v50, %v923_v32  ;;  %v1040_v45 = vrot.slane %v1028_v53, %v1711_v46 }
 0x2b0   :  { %v1182_v37 = vrot.slane %v1117_v55, %v1729_v9  ;;  %v1047_v3 = vrot.slane %v1033_v4, %v1711_v46  ;;  %v1120_v54 = vmul.f32 0.25, %v1104_v56  ;;  %v1121_v52 = vmul.f32 0.25, %v1105_v57 }
 0x2b1   :  { %v1186_v47 = vrot.slane %v1118_v58, %v1729_v9  ;;  %v1210_v5 = vsel %vm1004_vm2, %v1178_v1, %v1174_v29  ;;  %v1190_v60 = vrot.slane %v1119_v61, %v1729_v9  ;;  %v1048_v12 = vcombine.high %v1040_v45, %v1040_v45 }
 0x2b2   :  { %v1211_v10 = vsel %vm1006_vm3, %v1182_v37, %v1210_v5  ;;  %v1049_v13 = vcombine.high %v1047_v3, %v1047_v3  ;;  %v1067_v14 = vrot.slane %v1040_v45, 1  ;;  %v1122_v32 = vmul.f32 0.25, %v1106_v38 }
 0x2b3   :  { %v1212_v11 = vsel %vm1008_vm4, %v1186_v47, %v1211_v10  ;;  %v1069_v19 = vrot.slane %v1047_v3, 1  ;;  %v1091_v17 = vadd.f32 %v1040_v45, %v1753_v40  ;;  %v1095_v21 = vadd.f32 %v1047_v3, %v1741_v0 }
 0x2b4   :  { %v1068_v22 = vrot.slane %v1048_v12, 1  ;;  %v1070_v23 = vrot.slane %v1049_v13, 1  ;;  %v1092_v46 = vadd.f32 %v1067_v14, %v1770_v6  ;;  %v1093_v59 = vadd.f32 %v1048_v12, %v1772_v7 }
 0x2b5   :  { %v1213_v18 = vsel %vm1010_vm5, %v1190_v60, %v1212_v11  ;;  %v1096_v24 = vadd.f32 %v1069_v19, %v1779_v8  ;;  %v1097_v15 = vadd.f32 %v1049_v13, %v1792_v62  ;;  %v1107_v25 = vmul.f32 0.25, %v1091_v17 }
 0x2b6   :  { %v1094_v26 = vadd.f32 %v1068_v22, %v1776_v36  ;;  %v1098_v27 = vadd.f32 %v1070_v23, %v1798_v20  ;;  %v1108_v40 = vmul.f32 0.25, %v1092_v46  ;;  %v1109_v28 = vmul.f32 0.25, %v1093_v59 }
 0x2b7   :  { %v1194_v0 = vrot.slane %v1120_v54, %v1729_v9  ;;  %v1198_v30 = vrot.slane %v1121_v52, %v1729_v9  ;;  %v1111_v6 = vmul.f32 0.25, %v1095_v21  ;;  %v1112_v31 = vmul.f32 0.25, %v1096_v24 }
 0x2b8   :  { %v1110_v7 = vmul.f32 0.25, %v1094_v26  ;;  %v1142_v33 = vrot.slane %v1107_v25, %v1729_v9  ;;  %v1146_v8 = vrot.slane %v1108_v40, %v1729_v9  ;;  %v1150_v62 = vrot.slane %v1109_v28, %v1729_v9 }
 0x2b9   :  { %v1202_v34 = vrot.slane %v1122_v32, %v1729_v9  ;;  %v1113_v36 = vmul.f32 0.25, %v1097_v15  ;;  %v1214_v20 = vsel %vm1012_vm6, %v1194_v0, %v1213_v18  ;;  %v1114_v35 = vmul.f32 0.25, %v1098_v27 }
 0x2ba   :  { %v1154_v63 = vrot.slane %v1110_v7, %v1729_v9  ;;  %v1203_v39 = vsel %vm1004_vm2, %v1146_v8, %v1142_v33  ;;  %v1215_v41 = vsel %vm1014_vm7, %v1198_v30, %v1214_v20  ;;  %v1158_v42 = vrot.slane %v1111_v6, %v1729_v9 }
 0x2bb   :  { %v1204_v43 = vsel %vm1006_vm3, %v1150_v62, %v1203_v39  ;;  %v1216_v44 = vsel %vm1016_vm8, %v1202_v34, %v1215_v41  ;;  %v1162_v2 = vrot.slane %v1112_v31, %v1729_v9  ;;  %v1166_v49 = vrot.slane %v1113_v36, %v1729_v9 }
 0x2bc   :  { %v1205_v48 = vsel %vm1008_vm4, %v1154_v63, %v1204_v43  ;;  %1220 = vst [vmem:[#allocation7 + $0x8] sm:$0xff] %v1216_v44  ;;  %v1170_v51 = vrot.slane %v1114_v35, %v1729_v9 }
 0x2bd   :  { %v1206_v50 = vsel %vm1010_vm5, %v1158_v42, %v1205_v48 }
 0x2be   :  { %v1207_v53 = vsel %vm1012_vm6, %v1162_v2, %v1206_v50 }
 0x2bf   :  { %v1208_v16 = vsel %vm1014_vm7, %v1166_v49, %v1207_v53 }
 0x2c0   :  { %v1209_v55 = vsel %vm1016_vm8, %v1170_v51, %v1208_v16 }
 0x2c1   :  { %1219 = vst [vmem:[#allocation7] sm:$0xff] %v1209_v55 }
 0x2c2   :  { %1502 = shalt.err (!%p1499_p6)
}
 0x2c3   :  { %s1503_s16 = scalar_lea.hbm %s1882_s9, 256 }
 0x2c4   :  { %p1504_p7 = scmp.ne.s32.totalorder %s1882_s9, %s1503_s16  ;;  %p1507_p8 = scmp.lt.u32.totalorder %s1503_s16, %s1882_s9 }
 0x2c6   :  { %p1509_p9 = pnand %p1507_p8, %p1504_p7 }
 0x2c8   :  { %1512 = shalt.err (!%p1509_p9)
}
 0x2c9   :  { %s1527_s21 = smov 128   ;;  %s1528_s22 = smov 8  }
 0x2ca   :  { %1232 = dma.vmem_to_hbm [thread:$0]  %s1227_s4, 256, %s1882_s9, [#allocation4], %s1527_s21, %s1527_s21, %s1528_s22  }
 0x2cb   :  { %1517 = dma.done.wait [#allocation4], 256  }
 0x2cc   :  { %1518 = vsyncadd [#allocation4], 4294967040 }
 0x2cd   :  { %1236 = vsyncpa [#allocation3], 1 }
 0x2ce   :  { %1237 = vsyncpa [#allocation6], 1 }
 0x2cf   :  { %1238 = vsyncpa [#allocation4], 1 }

</bundles_post_ra>
